<compile_context>
chip_gen: v7x
topology: tpu7x:2x2x1
jax: 0.10.0
libtpu: 0.0.40
codegen_flags: <defaults>
</compile_context>

<pallas_src>
import jax
import jax.numpy as jnp
from jax import lax
from jax.experimental import pallas as pl
from jax.experimental.pallas import tpu as pltpu


def _make_kernel(B, K, L_pad):
    def kernel(w_ref, x_ref, o_ref):
        # w_ref: (C_out, K*C_pad)   -- flattened weight, resident across grid
        # x_ref: (B, C_pad, Lp_in)  -- B raw (zero-padded) batch elements
        # o_ref: (B, C_out, L_pad)  -- lane-dense padded output
        w = w_ref[...]
        for b in range(B):  # B is a small static block size (<= a few hundred)
            xb = x_ref[b]                                        # (C_pad, Lp_in)
            # In-kernel im2col: K static lane-shifted slices (cheap XLU work on
            # a ~few-KB tile), one sublane-aligned concatenate.  This feeds ONE
            # (C_out, K*C_pad) @ (K*C_pad, L_pad) MXU contraction -- not the
            # old K-matmul shift-and-accumulate pattern.
            patches = jnp.concatenate(
                [xb[:, k:k + L_pad] for k in range(K)], axis=0)  # (K*C_pad, L_pad)
            acc = jnp.dot(w, patches, preferred_element_type=jnp.float32)
            # Fused epilogue: subtract 1, ReLU, full-width lane-dense store.
            o_ref[b] = jnp.maximum(acc - 1.0, 0.0).astype(o_ref.dtype)
    return kernel


def _pick_batch_block(N):
    """Batch elements per grid step: amortize ~0.35us/step overhead, but keep
    >=2 grid steps when N > 1 so v7x megacore has work on both TensorCores."""
    if N <= 1:
        return 1
    b = min(N // 2, 256)          # cap keeps per-step VMEM footprint tiny
    while N % b:                  # exact divisor -> no ragged edge blocks
        b -= 1
    return b


def conv1d_sub_relu(x, w):
    """x: (N, C_in, L) f32, w: (C_out, C_in, K) f32 -> relu(conv1d(x, w) - 1)."""
    N, C_in, L = x.shape
    C_out, C_in_w, K = w.shape
    assert C_in == C_in_w
    L_out = L - K + 1                          # stride=1, padding=0

    # Lane-dense output width and the matching padded input length.
    L_pad = ((L_out + 127) // 128) * 128       # 181 -> 256
    Lp_in = L_pad + K - 1                      # 275 (always >= L)
    C_pad = 8                                  # sublane tile -> aligned concat
    assert C_in <= C_pad

    # --- tiny wrapper-side layout plumbing (few KB, no arithmetic) ----------
    # Zero-pad x: channels to 8 (aligned in-kernel concat pieces), length to
    # Lp_in (so every in-kernel slice/store is a full 256-lane tile).  This
    # pad is allowed to fuse straight into the pallas operand (see below).
    x_p = jnp.pad(x, ((0, 0), (0, C_pad - C_in), (0, Lp_in - L)))
    # Flattened weight: w_flat[co, k*C_pad + c] = w[co, c, k]  (zeros c>=C_in)
    w_flat = jnp.pad(w, ((0, 0), (0, C_pad - C_in), (0, 0)))       # (C_out, 8, K)
    w_flat = jnp.transpose(w_flat, (0, 2, 1)).reshape(C_out, K * C_pad)

    B = _pick_batch_block(N)
    grid = (N // B,)

    out_p = pl.pallas_call(
        _make_kernel(B, K, L_pad),
        out_shape=jax.ShapeDtypeStruct((N, C_out, L_pad), x.dtype),
        grid=grid,
        in_specs=[
            pl.BlockSpec((C_out, K * C_pad), lambda n: (0, 0)),    # weight (resident)
            pl.BlockSpec((B, C_pad, Lp_in), lambda n: (n, 0, 0)),  # raw x, B per step
        ],
        out_specs=pl.BlockSpec((B, C_out, L_pad), lambda n: (n, 0, 0)),
        compiler_params=pltpu.CompilerParams(
            dimension_semantics=("parallel",),
            # Let XLA fuse the small x zero-pad producer into the pallas
            # operand (removes the separate launch + HBM round trip).
            allow_input_fusion=[False, True],
        ),
    )(w_flat, x_p)

    # Slice the lane padding back off (pure layout, tiny).
    return out_p[:, :, :L_out]


def _ref(xv, wv):
    r = lax.conv_general_dilated(
        xv, wv, window_strides=(1,), padding="VALID",
        dimension_numbers=("NCH", "OIH", "NCH"))
    return jnp.maximum(r - 1.0, 0.0)


if __name__ == "__main__":
    key = jax.random.PRNGKey(0)
    kx, kw, kb = jax.random.split(key, 3)

    # Shapes implied by the module: x1 = randn(1, 3, 200), weight = randn(3, 3, 20)
    x = jax.random.normal(kx, (1, 3, 200), dtype=jnp.float32)
    w = jax.random.normal(kw, (3, 3, 20), dtype=jnp.float32)

    fn = jax.jit(conv1d_sub_relu)

    out = jax.block_until_ready(fn(x, w))
    assert out.shape == (1, 3, 181), out.shape
    assert jnp.allclose(out, _ref(x, w), atol=1e-3, rtol=1e-3)

    # Batched path: exercises B>1 per grid step and the 2-step parallel grid.
    xb = jax.random.normal(kb, (4, 3, 200), dtype=jnp.float32)
    outb = jax.block_until_ready(fn(xb, w))
    assert outb.shape == (4, 3, 181), outb.shape
    assert jnp.allclose(outb, _ref(xb, w), atol=1e-3, rtol=1e-3)

    print("KERNEL_OK")
</pallas_src>

<mosaic_0001>
module attributes {stable_mosaic.version = 11 : i64} {
  func.func @kernel(%arg0: i32, %arg1: memref<3x160xf32, #tpu.memory_space<vmem>>, %arg2: memref<1x8x275xf32, #tpu.memory_space<vmem>>, %arg3: memref<1x3x256xf32, #tpu.memory_space<vmem>>) attributes {dimension_semantics = [#tpu.dimension_semantics<parallel>], iteration_bounds = array<i64: 1>, scalar_prefetch = 0 : i64, scratch_operands = 0 : i64, tpu.core_type = #tpu.core_type<tc>, window_params = [{pipeline_mode = #tpu.pipeline_mode<synchronous>, transform_indices = @transform_0, window_bounds = array<i64: 3, 160>}, {transform_indices = @transform_1, window_bounds = array<i64: 1, 8, 275>}, {transform_indices = @transform_2, window_bounds = array<i64: 1, 3, 256>}]} {
    %c0 = arith.constant 0 : index
    %c0_0 = arith.constant 0 : index
    %0 = vector.load %arg1[%c0, %c0_0] : memref<3x160xf32, #tpu.memory_space<vmem>>, vector<3x160xf32>
    %c0_1 = arith.constant 0 : index
    %c0_2 = arith.constant 0 : index
    %c0_3 = arith.constant 0 : index
    %1 = vector.load %arg2[%c0_1, %c0_2, %c0_3] : memref<1x8x275xf32, #tpu.memory_space<vmem>>, vector<1x8x275xf32>
    %2 = vector.shape_cast %1 : vector<1x8x275xf32> to vector<8x275xf32>
    %3 = vector.extract_strided_slice %2 {offsets = [0, 0], sizes = [8, 256], strides = [1, 1]} : vector<8x275xf32> to vector<8x256xf32>
    %4 = vector.extract_strided_slice %2 {offsets = [0, 1], sizes = [8, 256], strides = [1, 1]} : vector<8x275xf32> to vector<8x256xf32>
    %5 = vector.extract_strided_slice %2 {offsets = [0, 2], sizes = [8, 256], strides = [1, 1]} : vector<8x275xf32> to vector<8x256xf32>
    %6 = vector.extract_strided_slice %2 {offsets = [0, 3], sizes = [8, 256], strides = [1, 1]} : vector<8x275xf32> to vector<8x256xf32>
    %7 = vector.extract_strided_slice %2 {offsets = [0, 4], sizes = [8, 256], strides = [1, 1]} : vector<8x275xf32> to vector<8x256xf32>
    %8 = vector.extract_strided_slice %2 {offsets = [0, 5], sizes = [8, 256], strides = [1, 1]} : vector<8x275xf32> to vector<8x256xf32>
    %9 = vector.extract_strided_slice %2 {offsets = [0, 6], sizes = [8, 256], strides = [1, 1]} : vector<8x275xf32> to vector<8x256xf32>
    %10 = vector.extract_strided_slice %2 {offsets = [0, 7], sizes = [8, 256], strides = [1, 1]} : vector<8x275xf32> to vector<8x256xf32>
    %11 = vector.extract_strided_slice %2 {offsets = [0, 8], sizes = [8, 256], strides = [1, 1]} : vector<8x275xf32> to vector<8x256xf32>
    %12 = vector.extract_strided_slice %2 {offsets = [0, 9], sizes = [8, 256], strides = [1, 1]} : vector<8x275xf32> to vector<8x256xf32>
    %13 = vector.extract_strided_slice %2 {offsets = [0, 10], sizes = [8, 256], strides = [1, 1]} : vector<8x275xf32> to vector<8x256xf32>
    %14 = vector.extract_strided_slice %2 {offsets = [0, 11], sizes = [8, 256], strides = [1, 1]} : vector<8x275xf32> to vector<8x256xf32>
    %15 = vector.extract_strided_slice %2 {offsets = [0, 12], sizes = [8, 256], strides = [1, 1]} : vector<8x275xf32> to vector<8x256xf32>
    %16 = vector.extract_strided_slice %2 {offsets = [0, 13], sizes = [8, 256], strides = [1, 1]} : vector<8x275xf32> to vector<8x256xf32>
    %17 = vector.extract_strided_slice %2 {offsets = [0, 14], sizes = [8, 256], strides = [1, 1]} : vector<8x275xf32> to vector<8x256xf32>
    %18 = vector.extract_strided_slice %2 {offsets = [0, 15], sizes = [8, 256], strides = [1, 1]} : vector<8x275xf32> to vector<8x256xf32>
    %19 = vector.extract_strided_slice %2 {offsets = [0, 16], sizes = [8, 256], strides = [1, 1]} : vector<8x275xf32> to vector<8x256xf32>
    %20 = vector.extract_strided_slice %2 {offsets = [0, 17], sizes = [8, 256], strides = [1, 1]} : vector<8x275xf32> to vector<8x256xf32>
    %21 = vector.extract_strided_slice %2 {offsets = [0, 18], sizes = [8, 256], strides = [1, 1]} : vector<8x275xf32> to vector<8x256xf32>
    %22 = vector.extract_strided_slice %2 {offsets = [0, 19], sizes = [8, 256], strides = [1, 1]} : vector<8x275xf32> to vector<8x256xf32>
    %23 = tpu.concatenate %3, %4, %5, %6, %7, %8, %9, %10, %11, %12, %13, %14, %15, %16, %17, %18 in 0 : vector<8x256xf32>, vector<8x256xf32>, vector<8x256xf32>, vector<8x256xf32>, vector<8x256xf32>, vector<8x256xf32>, vector<8x256xf32>, vector<8x256xf32>, vector<8x256xf32>, vector<8x256xf32>, vector<8x256xf32>, vector<8x256xf32>, vector<8x256xf32>, vector<8x256xf32>, vector<8x256xf32>, vector<8x256xf32> -> vector<128x256xf32>
    %24 = tpu.concatenate %19, %20, %21, %22 in 0 : vector<8x256xf32>, vector<8x256xf32>, vector<8x256xf32>, vector<8x256xf32> -> vector<32x256xf32>
    %25 = tpu.concatenate %23, %24 in 0 : vector<128x256xf32>, vector<32x256xf32> -> vector<160x256xf32>
    %cst = arith.constant dense<0.000000e+00> : vector<3x256xf32>
    %26 = tpu.matmul %0, %25, %cst {dimension_numbers = #tpu.dot_dimension_numbers<[1], [0], [0], [1], [0, 0, 1, 1], [], []>} : vector<3x160xf32>, vector<160x256xf32>, vector<3x256xf32> -> vector<3x256xf32>
    %cst_4 = arith.constant 1.000000e+00 : f32
    %27 = vector.broadcast %cst_4 : f32 to vector<3x256xf32>
    %28 = arith.subf %26, %27 : vector<3x256xf32>
    %cst_5 = arith.constant 0.000000e+00 : f32
    %29 = vector.broadcast %cst_5 : f32 to vector<3x256xf32>
    %30 = arith.maximumf %28, %29 : vector<3x256xf32>
    %c0_6 = arith.constant 0 : index
    %c0_7 = arith.constant 0 : index
    %c0_8 = arith.constant 0 : index
    %31 = vector.load %arg3[%c0_6, %c0_7, %c0_8] : memref<1x3x256xf32, #tpu.memory_space<vmem>>, vector<1x3x256xf32>
    %32 = vector.shape_cast %31 : vector<1x3x256xf32> to vector<3x256xf32>
    %33 = vector.shape_cast %30 : vector<3x256xf32> to vector<1x3x256xf32>
    tpu.vector_store %arg3[%c0_6, %c0_7, %c0_8], %33 {strides = array<i32>} : memref<1x3x256xf32, #tpu.memory_space<vmem>>, vector<1x3x256xf32>,
    return
  }
  func.func @transform_0(%arg0: i32) -> (i32, i32) {
    %c0_i32 = arith.constant 0 : i32
    %c0_i32_0 = arith.constant 0 : i32
    %c0_i32_1 = arith.constant 0 : i32
    return %c0_i32, %c0_i32_0 : i32, i32
  }
  func.func @transform_1(%arg0: i32) -> (i32, i32, i32) {
    %c0_i32 = arith.constant 0 : i32
    %c0_i32_0 = arith.constant 0 : i32
    %c0_i32_1 = arith.constant 0 : i32
    return %arg0, %c0_i32, %c0_i32_0 : i32, i32, i32
  }
  func.func @transform_2(%arg0: i32) -> (i32, i32, i32) {
    %c0_i32 = arith.constant 0 : i32
    %c0_i32_0 = arith.constant 0 : i32
    %c0_i32_1 = arith.constant 0 : i32
    return %arg0, %c0_i32, %c0_i32_0 : i32, i32, i32
  }
}

</mosaic_0001>

<bundles_post_ra>
// kernel: conv1d_sub_relu.2
= control target key start
LH: loop header
LB: loop body
LE: loop exit
PB: predicated region body
PF: predicated region fallthrough
CT: control target
= control target key end

     0   :  { %v14_v1 = vlaneseq  ;;  %s512_s18 = smov 125   ;;  %s514_s19 = smov 126   ;;  %vm68_vm2 = vcmask 1031168   ;;  %vm57_vm3 = vcmask 1039360   ;;  %vm79_vm4 = vcmask 1022976   ;;  %s614_s0 = inlined_call_operand.vmem [shape: f32[3,160], index: 0, kind: input, shape index: {}]   ;;  %s615_s1 = inlined_call_operand.vmem [shape: f32[1,3,200], index: 1, kind: input, shape index: {}]   ;;  %s616_s2 = inlined_call_operand.<no memory space> [shape: f32[], index: 2, kind: input, shape index: {}]   ;;  %s617_s3 = inlined_call_operand.vmem [shape: f32[1,3,256], index: 3, kind: output, shape index: {}]  }
   0x1   :  { %v8_v0 = vstv %s616_s2  ;;  %v13_v2 = vld [vmem:[%s615_s1] sm:$0x7]  ;;  %v346_v4 = vld [vmem:[%s615_s1 + $0x4] sm:$0x7]  ;;  %s513_s2 = smov 127   ;;  %s515_s1 = smov 124  }
   0x2   :  { %v15_v3 = vshrl.u32 %v14_v1, 7  ;;  %v34_v5 = vand.u32 127, %v14_v1  ;;  %s516_s20 = smov 123   ;;  %s517_s21 = smov 122   ;;  %vm90_vm5 = vcmask 1014784   ;;  %vm259_vm6 = vcmask 261120  }
   0x3   :  { %s518_s22 = smov 121   ;;  %s519_s23 = smov 120   ;;  %v587_v31 = vld [vmem:[%s614_s0] sm:$0x77]  ;;  %vm101_vm7 = vcmask 1006592   ;;  %vm112_vm8 = vcmask 998400  }
   0x4   :  { %vm17_vm0 = vcmp.lt.s32.totalorder %v15_v3, 3  ;;  %v35_v6 = vadd.s32 128, %v34_v5  ;;  %s520_s24 = smov 119   ;;  %s521_s25 = smov 118   ;;  %v258_v34 = vcombine.high %v587_v31, %v587_v31  ;;  %vm123_vm9 = vcmask 990208  }
   0x5   :  { %v557_v7 = vsel %vm17_vm0, %v13_v2, %v8_v0  ;;  %v32_v8 = vsel %vm17_vm0, %v346_v4, %v8_v0  ;;  %s522_s26 = smov 117   ;;  %s523_s27 = smov 116   ;;  %vm134_vm10 = vcmask 982016   ;;  %vm145_vm11 = vcmask 973824  }
   0x6   :  { %vm36_vm1 = vcmp.lt.s32.totalorder %v35_v6, 200  ;;  %73 = vrot.lane.b32.xlu1 %v557_v7, %s512_s18  ;;  %51 = vrot.lane.b32.xlu0 %v557_v7, %s513_s2  ;;  %s524_s28 = smov 115   ;;  %s525_s29 = smov 114   ;;  %vm156_vm12 = vcmask 965632   ;;  %vm167_vm13 = vcmask 957440   ;;  %vm178_vm14 = vcmask 949248  }
   0x7   :  { %v561_v9 = vsel %vm36_vm1, %v32_v8, %v8_v0  ;;  %s526_s30 = smov 113   ;;  %s527_s4 = smov 112   ;;  %347 = vmatprep.mubr.msk.f32.mxu0 %vm259_vm6, %v258_v34  ;;  %vm189_vm15 = vcmask 941056   ;;  %vm200_vm0 = vcmask 932864   ;;  %vm211_vm1 = vcmask 924672  }
   0x8   :  { %v411_v10 = vpack.i.bf16 %v8_v0, %v561_v9 }
   0xa   :  { %412 = vrot.lane.b32.xlu1 %v411_v10, %s514_s19  ;;  %407 = vrot.lane.b32.xlu0 %v411_v10, %s513_s2 }
   0xe   :  { %417 = vrot.lane.b32.xlu1 %v411_v10, %s512_s18  ;;  %62 = vrot.lane.b32.xlu0 %v557_v7, %s514_s19 }
  0x12   :  { %422 = vrot.lane.b32.xlu0 %v411_v10, %s515_s1  ;;  %427 = vrot.lane.b32.xlu1 %v411_v10, %s516_s20 }
  0x16   :  { %84 = vrot.lane.b32.xlu0 %v557_v7, %s515_s1  ;;  %95 = vrot.lane.b32.xlu1 %v557_v7, %s516_s20 }
  0x1a   :  { %432 = vrot.lane.b32.xlu0 %v411_v10, %s517_s21  ;;  %437 = vrot.lane.b32.xlu1 %v411_v10, %s518_s22 }
  0x1e   :  { %106 = vrot.lane.b32.xlu0 %v557_v7, %s517_s21  ;;  %117 = vrot.lane.b32.xlu1 %v557_v7, %s518_s22 }
  0x22   :  { %442 = vrot.lane.b32.xlu0 %v411_v10, %s519_s23  ;;  %447 = vrot.lane.b32.xlu1 %v411_v10, %s520_s24 }
  0x26   :  { %128 = vrot.lane.b32.xlu0 %v557_v7, %s519_s23  ;;  %139 = vrot.lane.b32.xlu1 %v557_v7, %s520_s24 }
  0x2a   :  { %452 = vrot.lane.b32.xlu0 %v411_v10, %s521_s25  ;;  %457 = vrot.lane.b32.xlu1 %v411_v10, %s522_s26 }
  0x2e   :  { %150 = vrot.lane.b32.xlu0 %v557_v7, %s521_s25  ;;  %161 = vrot.lane.b32.xlu1 %v557_v7, %s522_s26 }
  0x32   :  { %462 = vrot.lane.b32.xlu0 %v411_v10, %s523_s27  ;;  %467 = vrot.lane.b32.xlu1 %v411_v10, %s524_s28 }
  0x36   :  { %172 = vrot.lane.b32.xlu0 %v557_v7, %s523_s27  ;;  %183 = vrot.lane.b32.xlu1 %v557_v7, %s524_s28 }
  0x3a   :  { %472 = vrot.lane.b32.xlu0 %v411_v10, %s525_s29  ;;  %477 = vrot.lane.b32.xlu1 %v411_v10, %s526_s30 }
  0x3e   :  { %194 = vrot.lane.b32.xlu0 %v557_v7, %s525_s29  ;;  %205 = vrot.lane.b32.xlu1 %v557_v7, %s526_s30 }
  0x42   :  { %482 = vrot.lane.b32.xlu0 %v411_v10, %s527_s4 }
  0x78   :  { %v74_v11 = vpop.permute.xlu1 %73  ;;  %v52_v12 = vpop.permute.xlu0 %51 }
  0x7c   :  { %v413_v13 = vpop.permute.xlu1 %412  ;;  %v408_v14 = vpop.permute.xlu0 %407 }
  0x7d   :  { %v415_v15 = vunpack.i.h.bf16 %v413_v13  ;;  %v414_v16 = vunpack.i.l.bf16 %v413_v13  ;;  %v410_v17 = vunpack.i.h.bf16 %v408_v14  ;;  %v409_v18 = vunpack.i.l.bf16 %v408_v14 }
  0x7f   :  { %v59_v19 = vsel %vm57_vm3, %v409_v18, %v410_v17  ;;  %v58_v20 = vsel %vm57_vm3, %v52_v12, %v409_v18  ;;  %v70_v21 = vsel %vm68_vm2, %v414_v16, %v415_v15 }
  0x80   :  { %v486_v22 = vpack.i.bf16 %v410_v17, %v59_v19  ;;  %v418_v23 = vpop.permute.xlu1 %417  ;;  %v63_v24 = vpop.permute.xlu0 %62  ;;  %v350_v25 = vpack.c.bf16 %v59_v19, %v561_v9  ;;  %v491_v26 = vpack.i.bf16 %v58_v20, %v557_v7  ;;  %v352_v30 = vpack.c.bf16 %v58_v20, %v557_v7 }
  0x81   :  { %v420_v27 = vunpack.i.h.bf16 %v418_v23  ;;  %v419_v28 = vunpack.i.l.bf16 %v418_v23  ;;  %v69_v29 = vsel %vm68_vm2, %v63_v24, %v414_v16  ;;  %v496_v35 = vpack.i.bf16 %v415_v15, %v70_v21 }
  0x82   :  { %487 = vrot.lane.b32.xlu1 %v486_v22, %s527_s4  ;;  %351 = vmatprep.subr.bf16.mxu0 %v350_v25  ;;  %vm240_vm2 = vcmask 916480  }
  0x83   :  { %v81_v32 = vsel %vm79_vm4, %v419_v28, %v420_v27  ;;  %v80_v33 = vsel %vm79_vm4, %v74_v11, %v419_v28  ;;  %492 = vrot.lane.b32.xlu0 %v491_v26, %s527_s4  ;;  %353 = vmatpush1.bf16.msra.mxu0 %v352_v30 }
  0x84   :  { %v501_v36 = vpack.i.bf16 %v420_v27, %v81_v32  ;;  %v356_v37 = vpack.c.bf16 %v80_v33, %v69_v29  ;;  %v354_v38 = vpack.c.bf16 %v81_v32, %v70_v21  ;;  %v423_v39 = vpop.permute.xlu0 %422  ;;  %v428_v40 = vpop.permute.xlu1 %427  ;;  %v506_v47 = vpack.i.bf16 %v80_v33, %v69_v29 }
  0x85   :  { %v425_v41 = vunpack.i.h.bf16 %v423_v39  ;;  %v424_v42 = vunpack.i.l.bf16 %v423_v39  ;;  %v430_v43 = vunpack.i.h.bf16 %v428_v40  ;;  %v429_v44 = vunpack.i.l.bf16 %v428_v40 }
  0x86   :  { %497 = vrot.lane.b32.xlu1 %v496_v35, %s527_s4  ;;  %355 = vmatprep.subr.bf16.mxu0 %v354_v38 }
  0x87   :  { %502 = vrot.lane.b32.xlu0 %v501_v36, %s527_s4  ;;  %357 = vmatpush1.bf16.msra.mxu0 %v356_v37  ;;  %v92_v45 = vsel %vm90_vm5, %v424_v42, %v425_v41  ;;  %v103_v46 = vsel %vm101_vm7, %v429_v44, %v430_v43 }
  0x88   :  { %v85_v48 = vpop.permute.xlu0 %84  ;;  %v96_v49 = vpop.permute.xlu1 %95  ;;  %v358_v50 = vpack.c.bf16 %v103_v46, %v92_v45 }
  0x89   :  { %v91_v51 = vsel %vm90_vm5, %v85_v48, %v424_v42  ;;  %v102_v52 = vsel %vm101_vm7, %v96_v49, %v429_v44 }
  0x8a   :  { %507 = vrot.lane.b32.xlu1 %v506_v47, %s527_s4  ;;  %v360_v53 = vpack.c.bf16 %v102_v52, %v91_v51  ;;  %359 = vmatprep.subr.bf16.mxu0 %v358_v50 }
  0x8c   :  { %v433_v54 = vpop.permute.xlu0 %432  ;;  %v438_v55 = vpop.permute.xlu1 %437  ;;  %361 = vmatpush1.bf16.msra.mxu0 %v360_v53 }
  0x8d   :  { %v435_v56 = vunpack.i.h.bf16 %v433_v54  ;;  %v434_v57 = vunpack.i.l.bf16 %v433_v54  ;;  %v440_v58 = vunpack.i.h.bf16 %v438_v55  ;;  %v439_v59 = vunpack.i.l.bf16 %v438_v55 }
  0x8f   :  { %v114_v60 = vsel %vm112_vm8, %v434_v57, %v435_v56  ;;  %v125_v61 = vsel %vm123_vm9, %v439_v59, %v440_v58 }
  0x90   :  { %v107_v62 = vpop.permute.xlu0 %106  ;;  %v118_v63 = vpop.permute.xlu1 %117  ;;  %v362_v0 = vpack.c.bf16 %v125_v61, %v114_v60 }
  0x91   :  { %v113_v1 = vsel %vm112_vm8, %v107_v62, %v434_v57  ;;  %v124_v2 = vsel %vm123_vm9, %v118_v63, %v439_v59 }
  0x92   :  { %v364_v3 = vpack.c.bf16 %v124_v2, %v113_v1  ;;  %363 = vmatprep.subr.bf16.mxu0 %v362_v0 }
  0x94   :  { %v443_v4 = vpop.permute.xlu0 %442  ;;  %v448_v5 = vpop.permute.xlu1 %447  ;;  %365 = vmatpush1.bf16.msra.mxu0 %v364_v3 }
  0x95   :  { %v445_v6 = vunpack.i.h.bf16 %v443_v4  ;;  %v444_v7 = vunpack.i.l.bf16 %v443_v4  ;;  %v450_v8 = vunpack.i.h.bf16 %v448_v5  ;;  %v449_v9 = vunpack.i.l.bf16 %v448_v5 }
  0x97   :  { %v136_v10 = vsel %vm134_vm10, %v444_v7, %v445_v6  ;;  %v147_v11 = vsel %vm145_vm11, %v449_v9, %v450_v8 }
  0x98   :  { %v129_v12 = vpop.permute.xlu0 %128  ;;  %v140_v13 = vpop.permute.xlu1 %139  ;;  %v366_v14 = vpack.c.bf16 %v147_v11, %v136_v10 }
  0x99   :  { %v135_v15 = vsel %vm134_vm10, %v129_v12, %v444_v7  ;;  %v146_v16 = vsel %vm145_vm11, %v140_v13, %v449_v9 }
  0x9a   :  { %v368_v17 = vpack.c.bf16 %v146_v16, %v135_v15  ;;  %367 = vmatprep.subr.bf16.mxu0 %v366_v14 }
  0x9c   :  { %v453_v18 = vpop.permute.xlu0 %452  ;;  %v458_v19 = vpop.permute.xlu1 %457  ;;  %369 = vmatpush1.bf16.msra.mxu0 %v368_v17 }
  0x9d   :  { %v455_v20 = vunpack.i.h.bf16 %v453_v18  ;;  %v454_v21 = vunpack.i.l.bf16 %v453_v18  ;;  %v460_v22 = vunpack.i.h.bf16 %v458_v19  ;;  %v459_v23 = vunpack.i.l.bf16 %v458_v19 }
  0x9f   :  { %v158_v24 = vsel %vm156_vm12, %v454_v21, %v455_v20  ;;  %v169_v25 = vsel %vm167_vm13, %v459_v23, %v460_v22 }
  0xa0   :  { %v151_v26 = vpop.permute.xlu0 %150  ;;  %v162_v27 = vpop.permute.xlu1 %161  ;;  %v370_v28 = vpack.c.bf16 %v169_v25, %v158_v24 }
  0xa1   :  { %v157_v29 = vsel %vm156_vm12, %v151_v26, %v454_v21  ;;  %v168_v30 = vsel %vm167_vm13, %v162_v27, %v459_v23 }
  0xa2   :  { %v372_v32 = vpack.c.bf16 %v168_v30, %v157_v29  ;;  %371 = vmatprep.subr.bf16.mxu0 %v370_v28 }
  0xa4   :  { %v463_v33 = vpop.permute.xlu0 %462  ;;  %v468_v34 = vpop.permute.xlu1 %467  ;;  %373 = vmatpush1.bf16.msra.mxu0 %v372_v32 }
  0xa5   :  { %v465_v35 = vunpack.i.h.bf16 %v463_v33  ;;  %v464_v36 = vunpack.i.l.bf16 %v463_v33  ;;  %v470_v37 = vunpack.i.h.bf16 %v468_v34  ;;  %v469_v38 = vunpack.i.l.bf16 %v468_v34 }
  0xa7   :  { %v180_v39 = vsel %vm178_vm14, %v464_v36, %v465_v35  ;;  %v191_v40 = vsel %vm189_vm15, %v469_v38, %v470_v37 }
  0xa8   :  { %v173_v41 = vpop.permute.xlu0 %172  ;;  %v184_v42 = vpop.permute.xlu1 %183  ;;  %v374_v43 = vpack.c.bf16 %v191_v40, %v180_v39 }
  0xa9   :  { %v179_v44 = vsel %vm178_vm14, %v173_v41, %v464_v36  ;;  %v190_v45 = vsel %vm189_vm15, %v184_v42, %v469_v38 }
  0xaa   :  { %v376_v46 = vpack.c.bf16 %v190_v45, %v179_v44  ;;  %375 = vmatprep.subr.bf16.mxu0 %v374_v43 }
  0xac   :  { %v473_v47 = vpop.permute.xlu0 %472  ;;  %v478_v48 = vpop.permute.xlu1 %477  ;;  %377 = vmatpush1.bf16.msra.mxu0 %v376_v46 }
  0xad   :  { %v475_v49 = vunpack.i.h.bf16 %v473_v47  ;;  %v474_v50 = vunpack.i.l.bf16 %v473_v47  ;;  %v480_v51 = vunpack.i.h.bf16 %v478_v48  ;;  %v479_v52 = vunpack.i.l.bf16 %v478_v48 }
  0xaf   :  { %v202_v53 = vsel %vm200_vm0, %v474_v50, %v475_v49  ;;  %v213_v54 = vsel %vm211_vm1, %v479_v52, %v480_v51 }
  0xb0   :  { %v195_v55 = vpop.permute.xlu0 %194  ;;  %v206_v56 = vpop.permute.xlu1 %205  ;;  %v378_v57 = vpack.c.bf16 %v213_v54, %v202_v53 }
  0xb1   :  { %v201_v58 = vsel %vm200_vm0, %v195_v55, %v474_v50  ;;  %v212_v59 = vsel %vm211_vm1, %v206_v56, %v479_v52 }
  0xb2   :  { %v380_v60 = vpack.c.bf16 %v212_v59, %v201_v58  ;;  %379 = vmatprep.subr.bf16.mxu0 %v378_v57 }
  0xb4   :  { %381 = vmatpush1.bf16.msra.mxu0 %v380_v60  ;;  %v483_v61 = vpop.permute.xlu0 %482 }
  0xb5   :  { %v485_v62 = vunpack.i.h.bf16 %v483_v61  ;;  %v484_v63 = vunpack.i.l.bf16 %v483_v61 }
  0xb7   :  { %v242_v4 = vsel %vm240_vm2, %v484_v63, %v485_v62 }
  0xf4   :  { %v488_v0 = vpop.permute.xlu1 %487 }
  0xf5   :  { %v490_v1 = vunpack.i.h.bf16 %v488_v0  ;;  %v489_v2 = vunpack.i.l.bf16 %v488_v0  ;;  %v493_v3 = vpop.permute.xlu0 %492 }
  0xf6   :  { %v495_v5 = vunpack.i.h.bf16 %v493_v3  ;;  %v494_v6 = vunpack.i.l.bf16 %v493_v3 }
  0xf7   :  { %v244_v7 = vsel %vm240_vm2, %v489_v2, %v490_v1 }
  0xf8   :  { %v498_v8 = vpop.permute.xlu1 %497  ;;  %v382_v9 = vpack.c.bf16 %v244_v7, %v242_v4  ;;  %v241_v10 = vsel %vm240_vm2, %v494_v6, %v484_v63  ;;  %v243_v11 = vsel %vm240_vm2, %v495_v5, %v489_v2 }
  0xf9   :  { %v500_v12 = vunpack.i.h.bf16 %v498_v8  ;;  %v499_v13 = vunpack.i.l.bf16 %v498_v8  ;;  %v503_v14 = vpop.permute.xlu0 %502  ;;  %v384_v15 = vpack.c.bf16 %v243_v11, %v241_v10 }
  0xfa   :  { %v505_v16 = vunpack.i.h.bf16 %v503_v14  ;;  %v504_v17 = vunpack.i.l.bf16 %v503_v14  ;;  %383 = vmatprep.subr.bf16.mxu0 %v382_v9 }
  0xfb   :  { %385 = vmatpush1.bf16.msra.mxu0 %v384_v15  ;;  %v246_v18 = vsel %vm240_vm2, %v499_v13, %v500_v12 }
  0xfc   :  { %v508_v19 = vpop.permute.xlu1 %507  ;;  %v248_v20 = vsel %vm240_vm2, %v504_v17, %v505_v16 }
  0xfd   :  { %v510_v21 = vunpack.i.h.bf16 %v508_v19  ;;  %v509_v22 = vunpack.i.l.bf16 %v508_v19  ;;  %v386_v23 = vpack.c.bf16 %v248_v20, %v246_v18 }
  0xff   :  { %387 = vmatprep.subr.bf16.mxu0 %v386_v23  ;;  %v245_v24 = vsel %vm240_vm2, %v509_v22, %v499_v13  ;;  %v247_v25 = vsel %vm240_vm2, %v510_v21, %v504_v17 }
 0x100   :  { %v388_v26 = vpack.c.bf16 %v247_v25, %v245_v24 }
 0x102   :  { %389 = vmatpush1.bf16.msra.mxu0 %v388_v26 }
 0x105   :  { %327 = vmatmul.mubr.f32.vlgmr.msra.gmra.mrb[0].mxu0 %v587_v31 }
 0x1d8   :  { %v328_v27 = vpop.f32.mrb[0].mxu0 }
 0x1d9   :  { %v348_v28 = vadd.f32 -1.0, %v328_v27  ;;  %v330_v29 = vpop.f32.mrb[1].mxu0 }
 0x1da   :  { %v349_v30 = vadd.f32 -1.0, %v330_v29 }
 0x1db   :  { %v335_v32 = vmax.f32 %v348_v28, 0.0 }
 0x1dc   :  { %v336_v33 = vmax.f32 %v349_v30, 0.0 }
 0x1de   :  { %v339_v34 = vcombine.low %v335_v32, %v336_v33 }
 0x1e0   :  { %341 = vst [vmem:[%s617_s3] sm:$0x77] %v339_v34 }

</bundles_post_ra>
